<compile_context>
chip_gen: v5e
topology: v5e:2x2
jax: 0.10.0
libtpu: 0.0.40
codegen_flags: <defaults>
</compile_context>

<pallas_src>
import jax
import jax.numpy as jnp
from jax.experimental import pallas as pl
from jax.experimental.pallas import tpu as pltpu


def _round_up(v, m):
    return ((v + m - 1) // m) * m


def _pad2d(a, rows, cols, dtype):
    a = jnp.asarray(a)
    out = jnp.zeros((rows, cols), dtype)
    return out.at[: a.shape[0], : a.shape[1]].set(a.astype(dtype))


def _auto_tile_n(n, in_dim, itemsize):
    """Pick a batch tile: ~4 MiB of x per grid step, but keep >= 2 grid steps."""
    target_bytes = 4 << 20
    rows_for_target = target_bytes // max(1, in_dim * itemsize)
    cap_rows = max(16, (rows_for_target // 16) * 16)
    # Keep the grid >= 2 steps when possible so both v7x TensorCores get work.
    half = _round_up(max(1, pl.cdiv(n, 2)), 16)
    return max(16, min(cap_rows, half))


def _discriminator_kernel(x_ref, w1_ref, b1_ref, w2_ref, b2_ref, w3_ref, b3_ref, o_ref):
    """One batch tile of the fused 3-layer MLP.

    x_ref  : [TILE_N, in_dim]     (f32 or bf16)
    w1_ref : [in_dim, mid_pad]    lane-padded to a multiple of 128 (x dtype)
    b1_ref : [1, mid_pad]         f32
    w2_ref : [mid_pad, hid_pad]   (x dtype)
    b2_ref : [1, hid_pad]         f32
    w3_ref : [1, hid_pad]         third-layer weight as a row vector (x dtype)
    b3_ref : [1, 1]               f32
    o_ref  : [TILE_N, 1]          f32
    """
    # Layer 1: Linear(h2 -> h3) + ReLU.  MXU matmul with f32 accumulation; bias add /
    # ReLU stay in f32 (v5e has no bf16 VPU).
    h1 = jnp.dot(x_ref[...], w1_ref[...], preferred_element_type=jnp.float32)
    h1 = jnp.maximum(h1 + b1_ref[...], 0.0)

    # Layer 2: Linear(h3 -> h1) + ReLU.
    h2 = jnp.dot(h1.astype(w2_ref.dtype), w2_ref[...],
                 preferred_element_type=jnp.float32)
    h2 = jnp.maximum(h2 + b2_ref[...], 0.0)

    # Layer 3: Linear(h1 -> 1).  Output width 1 would waste the MXU, so do it as a VPU
    # multiply + XLU lane reduction (uses otherwise-idle slots).
    z = jnp.sum(h2 * w3_ref[...].astype(jnp.float32), axis=-1, keepdims=True)
    o_ref[...] = (z + b3_ref[...]).astype(o_ref.dtype)


def discriminator_forward(x, params, *, tile_n=None):
    """Run the Discriminator MLP as a batch-tiled, pipelined Pallas kernel.

    x: [N, hidden_dim2], float32 or bfloat16 (weights follow x.dtype; accumulation f32)
    params: dict with w1 [h2,h3], b1 [*,h3], w2 [h3,h1], b2 [*,h1], w3 [h1,1], b3 [1,1]
    returns: [N, 1] float32
    """
    n, in_dim = x.shape
    mid_dim = params["w1"].shape[1]      # hidden_dim3
    hid_dim = params["w2"].shape[1]      # hidden_dim1
    assert params["w1"].shape == (in_dim, mid_dim)
    assert params["w2"].shape == (mid_dim, hid_dim)
    assert params["w3"].shape == (hid_dim, 1)

    # Weights follow the activation dtype (no wrapper-side cast of x itself); biases f32.
    w_dtype = x.dtype

    # Lane-pad hidden feature dims to multiples of 128.  ReLU(0)=0 and zero weight
    # rows/cols keep the padding numerically exact.
    mid_pad = _round_up(mid_dim, 128)
    hid_pad = _round_up(hid_dim, 128)
    w1p = _pad2d(params["w1"], in_dim, mid_pad, w_dtype)
    b1p = _pad2d(jnp.asarray(params["b1"]).reshape(1, -1), 1, mid_pad, jnp.float32)
    w2p = _pad2d(params["w2"], mid_pad, hid_pad, w_dtype)
    b2p = _pad2d(jnp.asarray(params["b2"]).reshape(1, -1), 1, hid_pad, jnp.float32)
    w3r = _pad2d(jnp.asarray(params["w3"]).T, 1, hid_pad, w_dtype)   # row vector [1, hid_pad]
    b3 = jnp.asarray(params["b3"]).astype(jnp.float32).reshape(1, 1)

    itemsize = jnp.dtype(x.dtype).itemsize
    if tile_n is None:
        tile_n = _auto_tile_n(n, in_dim, itemsize)
    tile_n = max(16, _round_up(int(tile_n), 16))
    tile_n = min(tile_n, _round_up(n, 16))        # never larger than the batch

    grid = (pl.cdiv(n, tile_n),)                  # ragged last block: no jnp.pad of x

    # Advisory cost estimate for XLA scheduling around this short, mem-bound call.
    w_bytes = ((w1p.size + w2p.size + w3r.size) * jnp.dtype(w_dtype).itemsize
               + (b1p.size + b2p.size + b3.size) * 4)
    cost = pl.CostEstimate(
        flops=2 * n * (in_dim * mid_pad + mid_pad * hid_pad + hid_pad),
        transcendentals=0,
        bytes_accessed=n * in_dim * itemsize + n * 4 + w_bytes,
    )

    const = lambda i: (0, 0)
    out = pl.pallas_call(
        _discriminator_kernel,
        out_shape=jax.ShapeDtypeStruct((n, 1), jnp.float32),
        grid=grid,
        in_specs=[
            pl.BlockSpec((tile_n, in_dim), lambda i: (i, 0)),   # x: streamed batch tiles
            pl.BlockSpec((in_dim, mid_pad), const),             # w1: resident
            pl.BlockSpec((1, mid_pad), const),                  # b1
            pl.BlockSpec((mid_pad, hid_pad), const),            # w2
            pl.BlockSpec((1, hid_pad), const),                  # b2
            pl.BlockSpec((1, hid_pad), const),                  # w3 (row)
            pl.BlockSpec((1, 1), const),                        # b3
        ],
        out_specs=pl.BlockSpec((tile_n, 1), lambda i: (i, 0)),
        compiler_params=pltpu.CompilerParams(
            dimension_semantics=("parallel",),                  # megacore on v7x
            vmem_limit_bytes=32 * 1024 * 1024,                  # raises v5e's 16 MiB default
        ),
        cost_estimate=cost,
    )(x, w1p, b1p, w2p, b2p, w3r, b3)
    return out


def he_normal(key, in_features, out_features):
    # HeNormal: std = sqrt(2 / fan_in)
    std = jnp.sqrt(2.0 / in_features)
    return std * jax.random.normal(key, (in_features, out_features), dtype=jnp.float32)


def init_discriminator_params(key, hidden_dim1, hidden_dim2, hidden_dim3):
    k1, k2, k3 = jax.random.split(key, 3)
    return {
        "w1": he_normal(k1, hidden_dim2, hidden_dim3),
        "b1": jnp.zeros((1, hidden_dim3), jnp.float32),
        "w2": he_normal(k2, hidden_dim3, hidden_dim1),
        "b2": jnp.zeros((1, hidden_dim1), jnp.float32),
        "w3": he_normal(k3, hidden_dim1, 1),
        "b3": jnp.zeros((1, 1), jnp.float32),
    }


def _reference_forward(x, p):
    h1 = jnp.maximum(x @ p["w1"] + p["b1"], 0.0)
    h2 = jnp.maximum(h1 @ p["w2"] + p["b2"], 0.0)
    return h2 @ p["w3"] + p["b3"]


if __name__ == "__main__":
    # Shapes consistent with Discriminator(hidden_dim1=32, hidden_dim2=64, hidden_dim3=48).
    hidden_dim1, hidden_dim2, hidden_dim3 = 32, 64, 48
    batch = 300  # not a multiple of the tile -> exercises the ragged last block + 2-step grid

    key = jax.random.PRNGKey(0)
    kx, kp = jax.random.split(key)
    x = jax.random.normal(kx, (batch, hidden_dim2), dtype=jnp.float32)
    params = init_discriminator_params(kp, hidden_dim1, hidden_dim2, hidden_dim3)

    z_ref = _reference_forward(x, params)

    # f32 path (auto tile -> ~2 grid steps here; no wrapper-side pad/copy of x).
    z = discriminator_forward(x, params)
    jax.block_until_ready(z)
    assert z.shape == (batch, 1)
    assert jnp.allclose(z, z_ref, atol=1e-4, rtol=1e-4)

    # bf16 activation path: caller supplies bf16 x directly (halves x HBM traffic on all
    # generations); weights follow x.dtype, accumulation/bias/ReLU stay f32.
    z_bf16 = discriminator_forward(x.astype(jnp.bfloat16), params)
    jax.block_until_ready(z_bf16)
    assert z_bf16.shape == (batch, 1)
    assert float(jnp.max(jnp.abs(z_bf16 - z_ref))) < 0.25

    print("KERNEL_OK")
</pallas_src>

<mosaic_0001>
module attributes {stable_mosaic.version = 11 : i64} {
  func.func @_discriminator_kernel(%arg0: i32, %arg1: memref<160x64xf32, #tpu.memory_space<vmem>>, %arg2: memref<64x128xf32, #tpu.memory_space<vmem>>, %arg3: memref<1x128xf32, #tpu.memory_space<vmem>>, %arg4: memref<128x128xf32, #tpu.memory_space<vmem>>, %arg5: memref<1x128xf32, #tpu.memory_space<vmem>>, %arg6: memref<1x128xf32, #tpu.memory_space<vmem>>, %arg7: memref<1x1xf32, #tpu.memory_space<vmem>>, %arg8: memref<160x1xf32, #tpu.memory_space<vmem>>) attributes {dimension_semantics = [#tpu.dimension_semantics<parallel>], iteration_bounds = array<i64: 2>, scalar_prefetch = 0 : i64, scratch_operands = 0 : i64, tpu.core_type = #tpu.core_type<tc>, window_params = [{transform_indices = @transform_0, window_bounds = array<i64: 160, 64>}, {pipeline_mode = #tpu.pipeline_mode<synchronous>, transform_indices = @transform_1, window_bounds = array<i64: 64, 128>}, {pipeline_mode = #tpu.pipeline_mode<synchronous>, transform_indices = @transform_2, window_bounds = array<i64: 1, 128>}, {pipeline_mode = #tpu.pipeline_mode<synchronous>, transform_indices = @transform_3, window_bounds = array<i64: 128, 128>}, {pipeline_mode = #tpu.pipeline_mode<synchronous>, transform_indices = @transform_4, window_bounds = array<i64: 1, 128>}, {pipeline_mode = #tpu.pipeline_mode<synchronous>, transform_indices = @transform_5, window_bounds = array<i64: 1, 128>}, {pipeline_mode = #tpu.pipeline_mode<synchronous>, transform_indices = @transform_6, window_bounds = array<i64: 1, 1>}, {transform_indices = @transform_7, window_bounds = array<i64: 160, 1>}]} {
    %c0 = arith.constant 0 : index
    %c0_0 = arith.constant 0 : index
    %0 = vector.load %arg1[%c0, %c0_0] : memref<160x64xf32, #tpu.memory_space<vmem>>, vector<160x64xf32>
    %c0_1 = arith.constant 0 : index
    %c0_2 = arith.constant 0 : index
    %1 = vector.load %arg2[%c0_1, %c0_2] : memref<64x128xf32, #tpu.memory_space<vmem>>, vector<64x128xf32>
    %cst = arith.constant dense<0.000000e+00> : vector<160x128xf32>
    %2 = tpu.matmul %0, %1, %cst {dimension_numbers = #tpu.dot_dimension_numbers<[1], [0], [0], [1], [0, 0, 1, 1], [], []>} : vector<160x64xf32>, vector<64x128xf32>, vector<160x128xf32> -> vector<160x128xf32>
    %c0_3 = arith.constant 0 : index
    %c0_4 = arith.constant 0 : index
    %3 = vector.load %arg3[%c0_3, %c0_4] : memref<1x128xf32, #tpu.memory_space<vmem>>, vector<1x128xf32>
    %4 = vector.broadcast %3 : vector<1x128xf32> to vector<160x128xf32>
    %5 = arith.addf %2, %4 : vector<160x128xf32>
    %cst_5 = arith.constant 0.000000e+00 : f32
    %6 = vector.broadcast %cst_5 : f32 to vector<160x128xf32>
    %7 = arith.maximumf %5, %6 : vector<160x128xf32>
    %c0_6 = arith.constant 0 : index
    %c0_7 = arith.constant 0 : index
    %8 = vector.load %arg4[%c0_6, %c0_7] : memref<128x128xf32, #tpu.memory_space<vmem>>, vector<128x128xf32>
    %cst_8 = arith.constant dense<0.000000e+00> : vector<160x128xf32>
    %9 = tpu.matmul %7, %8, %cst_8 {dimension_numbers = #tpu.dot_dimension_numbers<[1], [0], [0], [1], [0, 0, 1, 1], [], []>} : vector<160x128xf32>, vector<128x128xf32>, vector<160x128xf32> -> vector<160x128xf32>
    %c0_9 = arith.constant 0 : index
    %c0_10 = arith.constant 0 : index
    %10 = vector.load %arg5[%c0_9, %c0_10] : memref<1x128xf32, #tpu.memory_space<vmem>>, vector<1x128xf32>
    %11 = vector.broadcast %10 : vector<1x128xf32> to vector<160x128xf32>
    %12 = arith.addf %9, %11 : vector<160x128xf32>
    %cst_11 = arith.constant 0.000000e+00 : f32
    %13 = vector.broadcast %cst_11 : f32 to vector<160x128xf32>
    %14 = arith.maximumf %12, %13 : vector<160x128xf32>
    %c0_12 = arith.constant 0 : index
    %c0_13 = arith.constant 0 : index
    %15 = vector.load %arg6[%c0_12, %c0_13] : memref<1x128xf32, #tpu.memory_space<vmem>>, vector<1x128xf32>
    %16 = vector.broadcast %15 : vector<1x128xf32> to vector<160x128xf32>
    %17 = arith.mulf %14, %16 : vector<160x128xf32>
    %cst_14 = arith.constant dense<0.000000e+00> : vector<160xf32>
    %18 = vector.multi_reduction <add>, %17, %cst_14 [1] : vector<160x128xf32> to vector<160xf32>
    %19 = vector.shape_cast %18 : vector<160xf32> to vector<160x1xf32>
    %c0_15 = arith.constant 0 : index
    %c0_16 = arith.constant 0 : index
    %20 = vector.load %arg7[%c0_15, %c0_16] : memref<1x1xf32, #tpu.memory_space<vmem>>, vector<1x1xf32>
    %21 = vector.broadcast %20 : vector<1x1xf32> to vector<160x1xf32>
    %22 = arith.addf %19, %21 : vector<160x1xf32>
    %c0_17 = arith.constant 0 : index
    %c0_18 = arith.constant 0 : index
    %23 = vector.load %arg8[%c0_17, %c0_18] : memref<160x1xf32, #tpu.memory_space<vmem>>, vector<160x1xf32>
    tpu.vector_store %arg8[%c0_17, %c0_18], %22 {strides = array<i32>} : memref<160x1xf32, #tpu.memory_space<vmem>>, vector<160x1xf32>,
    return
  }
  func.func @transform_0(%arg0: i32) -> (i32, i32) {
    %c0_i32 = arith.constant 0 : i32
    %c0_i32_0 = arith.constant 0 : i32
    return %arg0, %c0_i32 : i32, i32
  }
  func.func @transform_1(%arg0: i32) -> (i32, i32) {
    %c0_i32 = arith.constant 0 : i32
    %c0_i32_0 = arith.constant 0 : i32
    %c0_i32_1 = arith.constant 0 : i32
    return %c0_i32, %c0_i32_0 : i32, i32
  }
  func.func @transform_2(%arg0: i32) -> (i32, i32) {
    %c0_i32 = arith.constant 0 : i32
    %c0_i32_0 = arith.constant 0 : i32
    %c0_i32_1 = arith.constant 0 : i32
    return %c0_i32, %c0_i32_0 : i32, i32
  }
  func.func @transform_3(%arg0: i32) -> (i32, i32) {
    %c0_i32 = arith.constant 0 : i32
    %c0_i32_0 = arith.constant 0 : i32
    %c0_i32_1 = arith.constant 0 : i32
    return %c0_i32, %c0_i32_0 : i32, i32
  }
  func.func @transform_4(%arg0: i32) -> (i32, i32) {
    %c0_i32 = arith.constant 0 : i32
    %c0_i32_0 = arith.constant 0 : i32
    %c0_i32_1 = arith.constant 0 : i32
    return %c0_i32, %c0_i32_0 : i32, i32
  }
  func.func @transform_5(%arg0: i32) -> (i32, i32) {
    %c0_i32 = arith.constant 0 : i32
    %c0_i32_0 = arith.constant 0 : i32
    %c0_i32_1 = arith.constant 0 : i32
    return %c0_i32, %c0_i32_0 : i32, i32
  }
  func.func @transform_6(%arg0: i32) -> (i32, i32) {
    %c0_i32 = arith.constant 0 : i32
    %c0_i32_0 = arith.constant 0 : i32
    %c0_i32_1 = arith.constant 0 : i32
    return %c0_i32, %c0_i32_0 : i32, i32
  }
  func.func @transform_7(%arg0: i32) -> (i32, i32) {
    %c0_i32 = arith.constant 0 : i32
    %c0_i32_0 = arith.constant 0 : i32
    return %arg0, %c0_i32 : i32, i32
  }
}

</mosaic_0001>

<bundles_post_ra>
// kernel: tpu_custom_call.1
= control target key start
LH: loop header
LB: loop body
LE: loop exit
PB: predicated region body
PF: predicated region fallthrough
CT: control target
= control target key end

     0   :  { %s1723_s0 = inlined_call_operand.vmem [shape: f32[300,64], index: 0, kind: input, shape index: {}]   ;;  %s1724_s1 = inlined_call_operand.vmem [shape: f32[64,128], index: 1, kind: input, shape index: {}]   ;;  %s1725_s2 = inlined_call_operand.vmem [shape: f32[1,128], index: 2, kind: input, shape index: {}]   ;;  %s1726_s3 = inlined_call_operand.vmem [shape: f32[128,128], index: 3, kind: input, shape index: {}]   ;;  %s1727_s4 = inlined_call_operand.vmem [shape: f32[1,128], index: 4, kind: input, shape index: {}]   ;;  %s1728_s5 = inlined_call_operand.vmem [shape: f32[1,128], index: 5, kind: input, shape index: {}]   ;;  %s1729_s6 = inlined_call_operand.<no memory space> [shape: f32[1,1], index: 6, kind: input, shape index: {}]   ;;  %s1730_s7 = inlined_call_operand.vmem [shape: f32[300,1], index: 7, kind: output, shape index: {}]  }
   0x1   :  { %v12_v0 = vstv %s1729_s6 }
   0x2   :  { %13 = vst [vmem:[#allocation2] sm:$0x1] %v12_v0 }
   0x3   :  { %s1321_s26 = smov 0   ;;  %s1323_s27 = smov 0  }
   0x4   :  { %s1325_s28 = smov 0  }
   0x5 LB: > { %s1334_s6 = sadd.s32 4294967295, %s1244_s28   ;;  %s1336_s29 = sadd.s32 1, %s1244_s28   ;;  %s1244_s28 = sphi %s1325_s28, %s1739_s28   ;;  %s1240_s27 = sphi %s1323_s27, %s1738_s27   ;;  %s1236_s26 = sphi %s1321_s26, %s1737_s26  }
   0x6   : > { %s175_s30 = ssub.s32 %s1244_s28, %s1336_s29  ;;  %s178_s8 = sadd.s32 1, %s1240_s27 }
   0x7   : > { %p176_p0 = scmp.eq.s32.totalorder %s175_s30, 0  ;;  %p188_p1 = scmp.ne.s32.totalorder %s1240_s27, %s1236_s26 }
   0x8   : > { %p189_p2 = scmp.eq.s32.totalorder %s1334_s6, 1  ;;  %p1015_p3 = scmp.ge.s32.totalorder %s1244_s28, 1 }
   0x9   : > { %s1344_s9 = scalar_select %p176_p0, %s1240_s27, %s178_s8  }
   0xa   : > { %p1346_p4 = por %p189_p2, %p188_p1  ;;  %p248_p5 = scmp.lt.s32.totalorder %s1244_s28, 3 }
   0xc   : > { %p249_p6 = pnand %p1015_p3, %p248_p5 }
   0xd   : > { %s1357_s15 = smul.u32 (!%p249_p6), 20, %s1334_s6  ;;  %s280_s21 = sand.u32 (!%p249_p6), 1, %s1236_s26  }
   0xe   : > { %252 = sbr.rel (%p249_p6) target bundleno = 626 (0x272), region = 48 }
   0xf   : > { %p288_p7 = scmp.lt.s32.totalorder (!%p249_p6), %s1357_s15, 37  ;;  %s1090_s22 = smul.u32 (!%p249_p6), 160, %s280_s21 }
  0x13   : > { %v329_v1 = vld [vmem:[%s1724_s1 + $0x38] sm:$0xff]  ;;  %v328_v2 = vld [vmem:[%s1724_s1 + $0x30] sm:$0xff]  ;;  %v327_v3 = vld [vmem:[%s1724_s1 + $0x28] sm:$0xff]  ;;  %s289_s20 = scalar_select %p288_p7, %s1357_s15, 37  ;;  %vm334_vm0 = vcmask 523264   ;;  %vm697_vm1 = vcmask 7168  }
  0x14   : > { %403 = vmatpush.msra.mxu0 %v329_v1  ;;  %1050 = vmatpush.msra.mxu3 %v329_v1  ;;  %v326_v4 = vld [vmem:[%s1724_s1 + $0x20] sm:$0xff]  ;;  %v325_v5 = vld [vmem:[%s1724_s1 + $0x18] sm:$0xff]  ;;  %v324_v6 = vld [vmem:[%s1724_s1 + $0x10] sm:$0xff]  ;;  %s726_s26 = ssub.s32 (%p1346_p4), 38, %s1357_s15  ;;  %s1049_s24 = smul.u32 (%p1346_p4), 160, %s1334_s6 }
  0x15   : > { %s1016_s23 = sshll.u32 %s289_s20, 3  ;;  %v323_v7 = vld [vmem:[%s1724_s1 + $0x8] sm:$0xff]  ;;  %v322_v8 = vld [vmem:[%s1724_s1] sm:$0xff]  ;;  %v507_v19 = vld [vmem:[%s1726_s3 + $0x78] sm:$0xff]  ;;  %p727_p8 = scmp.lt.s32.totalorder (%p1346_p4), %s726_s26, 20 }
  0x16   : > { %404 = vmatpush.msra.mxu0 %v328_v2  ;;  %1051 = vmatpush.msra.mxu3 %v328_v2  ;;  %s1379_s12 = scalar_lea.vmem %s1723_s0, %s1016_s23  ;;  %v506_v20 = vld [vmem:[%s1726_s3 + $0x70] sm:$0xff]  ;;  %v505_v21 = vld [vmem:[%s1726_s3 + $0x68] sm:$0xff]  ;;  %v504_v23 = vld [vmem:[%s1726_s3 + $0x60] sm:$0xff]  ;;  %s1541_s23 = scalar_lea.vmem [#allocation3], %s1090_s22  }
  0x17   : > { %v302_v9 = vld [vmem:[%s1379_s12] sm:$0xff]  ;;  %v303_v10 = vld [vmem:[%s1379_s12 + $0x8] sm:$0xff]  ;;  %v304_v11 = vld [vmem:[%s1379_s12 + $0x10] sm:$0xff]  ;;  %512 = vmatpush.msra.mxu1 %v507_v19  ;;  %1058 = vmatpush.msra.mxu2 %v507_v19  ;;  %s1619_s30 = scalar_lea.vmem (%p1346_p4), %s1730_s7, %s1049_s24  }
  0x18   : > { %405 = vmatpush.msra.mxu0 %v327_v3  ;;  %1052 = vmatpush.msra.mxu3 %v327_v3  ;;  %v305_v12 = vld [vmem:[%s1379_s12 + $0x18] sm:$0xff]  ;;  %v306_v13 = vld [vmem:[%s1379_s12 + $0x20] sm:$0xff]  ;;  %v307_v15 = vld [vmem:[%s1379_s12 + $0x28] sm:$0xff] }
  0x19   : > { %v313_v14 = vld [vmem:[%s1379_s12 + $0x58] sm:$0xff]  ;;  %v314_v16 = vld [vmem:[%s1379_s12 + $0x60] sm:$0xff]  ;;  %v308_v17 = vld [vmem:[%s1379_s12 + $0x30] sm:$0xff]  ;;  %513 = vmatpush.msra.mxu1 %v506_v20  ;;  %1060 = vmatpush.msra.mxu2 %v506_v20 }
  0x1a   : > { %406 = vmatpush.msra.mxu0 %v326_v4  ;;  %1053 = vmatpush.msra.mxu3 %v326_v4  ;;  %v315_v18 = vld [vmem:[%s1379_s12 + $0x68] sm:$0xff]  ;;  %v309_v22 = vld [vmem:[%s1379_s12 + $0x38] sm:$0xff]  ;;  %v316_v24 = vld [vmem:[%s1379_s12 + $0x70] sm:$0xff] }
  0x1b   : > { %514 = vmatpush.msra.mxu1 %v505_v21  ;;  %1062 = vmatpush.msra.mxu2 %v505_v21  ;;  %v503_v25 = vld [vmem:[%s1726_s3 + $0x58] sm:$0xff]  ;;  %v502_v26 = vld [vmem:[%s1726_s3 + $0x50] sm:$0xff]  ;;  %v501_v27 = vld [vmem:[%s1726_s3 + $0x48] sm:$0xff] }
  0x1c   : > { %407 = vmatpush.msra.mxu0 %v325_v5  ;;  %1054 = vmatpush.msra.mxu3 %v325_v5  ;;  %v310_v28 = vld [vmem:[%s1379_s12 + $0x40] sm:$0xff]  ;;  %v317_v30 = vld [vmem:[%s1379_s12 + $0x78] sm:$0xff]  ;;  %v498_v32 = vld [vmem:[%s1726_s3 + $0x30] sm:$0xff] }
  0x1d   : > { %515 = vmatpush.msra.mxu1 %v504_v23  ;;  %1064 = vmatpush.msra.mxu2 %v504_v23  ;;  %v500_v29 = vld [vmem:[%s1726_s3 + $0x40] sm:$0xff]  ;;  %v499_v31 = vld [vmem:[%s1726_s3 + $0x38] sm:$0xff]  ;;  %v497_v33 = vld [vmem:[%s1726_s3 + $0x28] sm:$0xff] }
  0x1e   : > { %408 = vmatpush.msra.mxu0 %v324_v6  ;;  %1055 = vmatpush.msra.mxu3 %v324_v6  ;;  %v311_v34 = vld [vmem:[%s1379_s12 + $0x48] sm:$0xff]  ;;  %v496_v35 = vld [vmem:[%s1726_s3 + $0x20] sm:$0xff]  ;;  %v495_v37 = vld [vmem:[%s1726_s3 + $0x18] sm:$0xff] }
  0x1f   : > { %516 = vmatpush.msra.mxu1 %v503_v25  ;;  %1066 = vmatpush.msra.mxu2 %v503_v25  ;;  %v318_v36 = vld [vmem:[%s1379_s12 + $0x80] sm:$0xff]  ;;  %v312_v38 = vld [vmem:[%s1379_s12 + $0x50] sm:$0xff]  ;;  %v319_v39 = vld [vmem:[%s1379_s12 + $0x88] sm:$0xff] }
  0x20   : > { %409 = vmatpush.msra.mxu0 %v323_v7  ;;  %1056 = vmatpush.msra.mxu3 %v323_v7  ;;  %v320_v40 = vld [vmem:[%s1379_s12 + $0x90] sm:$0xff]  ;;  %v493_v42 = vld [vmem:[%s1726_s3 + $0x8] sm:$0xff]  ;;  %v492_v43 = vld [vmem:[%s1726_s3] sm:$0xff] }
  0x21   : > { %517 = vmatpush.msra.mxu1 %v502_v26  ;;  %1068 = vmatpush.msra.mxu2 %v502_v26  ;;  %v494_v41 = vld [vmem:[%s1726_s3 + $0x10] sm:$0xff]  ;;  %v321_v44 = vld [vmem:[%s1379_s12 + $0x98] sm:$0xff]  ;;  %v1475_v45 = vld [vmem:[%s1725_s2] ss:$0 sm:$0xff] }
  0x22   : > { %410 = vmatpush.msra.mxu0 %v322_v8  ;;  %1057 = vmatpush.msra.mxu3 %v322_v8 }
  0x23   : > { %1017 = vmatmul.msk.f32.vlgmr.msra.gmra.mxu0 %vm334_vm0, %v302_v9  ;;  %1028 = vmatmul.msk.f32.vlgmr.msra.gmra.mxu3 %vm334_vm0, %v313_v14 }
  0x24   : > { %1059 = vmatpush.msrb.mxu3 %v507_v19  ;;  %518 = vmatpush.msra.mxu1 %v501_v27 }
  0x25   : > { %1070 = vmatpush.msra.mxu2 %v501_v27 }
  0x26   : > { %1061 = vmatpush.msrb.mxu3 %v506_v20  ;;  %519 = vmatpush.msra.mxu1 %v500_v29 }
  0x27   : > { %1072 = vmatpush.msra.mxu2 %v500_v29 }
  0x28   : > { %1063 = vmatpush.msrb.mxu3 %v505_v21  ;;  %520 = vmatpush.msra.mxu1 %v499_v31 }
  0x29   : > { %1074 = vmatpush.msra.mxu2 %v499_v31 }
  0x2a   : > { %1065 = vmatpush.msrb.mxu3 %v504_v23  ;;  %521 = vmatpush.msra.mxu1 %v498_v32 }
  0x2b   : > { %1018 = vmatmul.msk.f32.gmra.mxu0 %vm334_vm0, %v303_v10  ;;  %1029 = vmatmul.msk.f32.gmra.mxu3 %vm334_vm0, %v314_v16 }
  0x2c   : > { %1067 = vmatpush.msrb.mxu3 %v503_v25  ;;  %1076 = vmatpush.msra.mxu2 %v498_v32 }
  0x2d   : > { %522 = vmatpush.msra.mxu1 %v497_v33 }
  0x2e   : > { %1069 = vmatpush.msrb.mxu3 %v502_v26  ;;  %1078 = vmatpush.msra.mxu2 %v497_v33 }
  0x2f   : > { %523 = vmatpush.msra.mxu1 %v496_v35 }
  0x30   : > { %1071 = vmatpush.msrb.mxu3 %v501_v27  ;;  %1080 = vmatpush.msra.mxu2 %v496_v35 }
  0x31   : > { %524 = vmatpush.msra.mxu1 %v495_v37 }
  0x32   : > { %1073 = vmatpush.msrb.mxu3 %v500_v29  ;;  %1082 = vmatpush.msra.mxu2 %v495_v37 }
  0x33   : > { %1019 = vmatmul.msk.f32.gmra.mxu0 %vm334_vm0, %v304_v11  ;;  %1030 = vmatmul.msk.f32.gmra.mxu3 %vm334_vm0, %v315_v18 }
  0x34   : > { %1075 = vmatpush.msrb.mxu3 %v499_v31  ;;  %525 = vmatpush.msra.mxu1 %v494_v41 }
  0x35   : > { %1084 = vmatpush.msra.mxu2 %v494_v41 }
  0x36   : > { %1077 = vmatpush.msrb.mxu3 %v498_v32  ;;  %526 = vmatpush.msra.mxu1 %v493_v42 }
  0x37   : > { %1086 = vmatpush.msra.mxu2 %v493_v42 }
  0x38   : > { %1079 = vmatpush.msrb.mxu3 %v497_v33  ;;  %527 = vmatpush.msra.mxu1 %v492_v43 }
  0x39   : > { %1088 = vmatpush.msra.mxu2 %v492_v43 }
  0x3a   : > { %1081 = vmatpush.msrb.mxu3 %v496_v35 }
  0x3b   : > { %1020 = vmatmul.msk.f32.gmra.mxu0 %vm334_vm0, %v305_v12  ;;  %1031 = vmatmul.msk.f32.gmra.mxu3 %vm334_vm0, %v316_v24 }
  0x3c   : > { %1083 = vmatpush.msrb.mxu3 %v495_v37 }
  0x3e   : > { %1085 = vmatpush.msrb.mxu3 %v494_v41 }
  0x40   : > { %1087 = vmatpush.msrb.mxu3 %v493_v42 }
  0x42   : > { %1089 = vmatpush.msrb.mxu3 %v492_v43  ;;  %v1505_v43 = vld [vmem:[%s1728_s5] ss:$0 sm:$0xff] }
  0x43   : > { %1021 = vmatmul.msk.f32.gmra.mxu0 %vm334_vm0, %v306_v13  ;;  %1032 = vmatmul.msk.f32.gmra.mxu3 %vm334_vm0, %v317_v30 }
  0x4b   : > { %1022 = vmatmul.msk.f32.gmra.mxu0 %vm334_vm0, %v307_v15  ;;  %1033 = vmatmul.msk.f32.gmra.mxu3 %vm334_vm0, %v318_v36 }
  0x53   : > { %1023 = vmatmul.msk.f32.gmra.mxu0 %vm334_vm0, %v308_v17  ;;  %1034 = vmatmul.msk.f32.gmra.mxu3 %vm334_vm0, %v319_v39  ;;  %v1499_v39 = vld [vmem:[%s1727_s4] ss:$0 sm:$0xff] }
  0x5b   : > { %1024 = vmatmul.msk.f32.gmra.mxu0 %vm334_vm0, %v309_v22  ;;  %1035 = vmatmul.msk.f32.gmra.mxu3 %vm334_vm0, %v320_v40 }
  0x63   : > { %1025 = vmatmul.msk.f32.gmra.mxu0 %vm334_vm0, %v310_v28  ;;  %1036 = vmatmul.msk.f32.gmra.mxu3 %vm334_vm0, %v321_v44 }
  0x6b   : > { %1026 = vmatmul.msk.f32.gmra.mxu0 %vm334_vm0, %v311_v34 }
  0x73   : > { %1027 = vmatmul.msk.f32.gmra.mxu0 %vm334_vm0, %v312_v38 }
  0xa0   : > { %v412_v46 = vpop.f32.mrf.mxu0 }
  0xa1   : > { %v413_v47 = vadd.f32 %v1475_v45, %v412_v46 }
  0xa3   : > { %v472_v48 = vmax.f32 %v413_v47, 0.0 }
  0xa5   : > { %528 = vmatmul.f32.vlgmr.msra.gmra.mxu1 %v472_v48 }
  0xa6   : > { %v445_v62 = vpop.f32.mrf.mxu3 }
  0xa7   : > { %v446_v21 = vadd.f32 %v1475_v45, %v445_v62 }
  0xa8   : > { %v415_v49 = vpop.f32.mrf.mxu0 }
  0xa9   : > { %v416_v50 = vadd.f32 %v1475_v45, %v415_v49  ;;  %v483_v23 = vmax.f32 %v446_v21, 0.0 }
  0xab   : > { %v473_v51 = vmax.f32 %v416_v50, 0.0 }
  0xad   : > { %531 = vmatmul.f32.gmra.mxu1 %v473_v51 }
  0xae   : > { %v448_v2 = vpop.f32.mrf.mxu3 }
  0xaf   : > { %v449_v24 = vadd.f32 %v1475_v45, %v448_v2 }
  0xb0   : > { %v418_v52 = vpop.f32.mrf.mxu0 }
  0xb1   : > { %v419_v53 = vadd.f32 %v1475_v45, %v418_v52  ;;  %v484_v27 = vmax.f32 %v449_v24, 0.0 }
  0xb3   : > { %v474_v54 = vmax.f32 %v419_v53, 0.0 }
  0xb5   : > { %534 = vmatmul.f32.gmra.mxu1 %v474_v54 }
  0xb6   : > { %v451_v6 = vpop.f32.mrf.mxu3 }
  0xb7   : > { %v452_v29 = vadd.f32 %v1475_v45, %v451_v6 }
  0xb8   : > { %v421_v55 = vpop.f32.mrf.mxu0 }
  0xb9   : > { %v422_v56 = vadd.f32 %v1475_v45, %v421_v55  ;;  %v485_v32 = vmax.f32 %v452_v29, 0.0 }
  0xbb   : > { %v475_v57 = vmax.f32 %v422_v56, 0.0 }
  0xbd   : > { %537 = vmatmul.f32.gmra.mxu1 %v475_v57 }
  0xbe   : > { %v454_v10 = vpop.f32.mrf.mxu3 }
  0xbf   : > { %v455_v34 = vadd.f32 %v1475_v45, %v454_v10 }
  0xc0   : > { %v424_v58 = vpop.f32.mrf.mxu0 }
  0xc1   : > { %v425_v59 = vadd.f32 %v1475_v45, %v424_v58  ;;  %v486_v35 = vmax.f32 %v455_v34, 0.0 }
  0xc3   : > { %v476_v60 = vmax.f32 %v425_v59, 0.0 }
  0xc5   : > { %540 = vmatmul.f32.gmra.mxu1 %v476_v60 }
  0xc6   : > { %v457_v14 = vpop.f32.mrf.mxu3 }
  0xc7   : > { %v458_v36 = vadd.f32 %v1475_v45, %v457_v14 }
  0xc8   : > { %v427_v61 = vpop.f32.mrf.mxu0 }
  0xc9   : > { %v428_v63 = vadd.f32 %v1475_v45, %v427_v61  ;;  %v487_v37 = vmax.f32 %v458_v36, 0.0 }
  0xcb   : > { %v477_v0 = vmax.f32 %v428_v63, 0.0 }
  0xcd   : > { %543 = vmatmul.f32.gmra.mxu1 %v477_v0 }
  0xce   : > { %v460_v18 = vpop.f32.mrf.mxu3 }
  0xcf   : > { %v461_v38 = vadd.f32 %v1475_v45, %v460_v18 }
  0xd0   : > { %v430_v1 = vpop.f32.mrf.mxu0 }
  0xd1   : > { %v431_v3 = vadd.f32 %v1475_v45, %v430_v1  ;;  %v488_v41 = vmax.f32 %v461_v38, 0.0  ;;  %v1537_v38 = vld [vmem:[#allocation2] ss:$0 sm:$0xff] }
  0xd3   : > { %v478_v4 = vmax.f32 %v431_v3, 0.0 }
  0xd5   : > { %546 = vmatmul.f32.gmra.mxu1 %v478_v4 }
  0xd6   : > { %v463_v22 = vpop.f32.mrf.mxu3 }
  0xd7   : > { %v464_v46 = vadd.f32 %v1475_v45, %v463_v22 }
  0xd8   : > { %v433_v5 = vpop.f32.mrf.mxu0 }
  0xd9   : > { %v434_v7 = vadd.f32 %v1475_v45, %v433_v5  ;;  %v489_v49 = vmax.f32 %v464_v46, 0.0 }
  0xdb   : > { %v479_v8 = vmax.f32 %v434_v7, 0.0 }
  0xdd   : > { %549 = vmatmul.f32.gmra.mxu1 %v479_v8 }
  0xde   : > { %v466_v25 = vpop.f32.mrf.mxu3 }
  0xdf   : > { %v467_v26 = vadd.f32 %v1475_v45, %v466_v25 }
  0xe0   : > { %v436_v9 = vpop.f32.mrf.mxu0 }
  0xe1   : > { %v437_v11 = vadd.f32 %v1475_v45, %v436_v9  ;;  %v490_v28 = vmax.f32 %v467_v26, 0.0 }
  0xe3   : > { %v480_v12 = vmax.f32 %v437_v11, 0.0  ;;  %582 = vmatmul.f32.vlgmr.msrb.gmra.mxu3 %v490_v28 }
  0xe5   : > { %552 = vmatmul.f32.gmra.mxu1 %v480_v12 }
  0xe6   : > { %v469_v30 = vpop.f32.mrf.mxu3 }
  0xe7   : > { %v470_v31 = vadd.f32 %v1475_v45, %v469_v30 }
  0xe8   : > { %v439_v13 = vpop.f32.mrf.mxu0 }
  0xe9   : > { %v440_v15 = vadd.f32 %v1475_v45, %v439_v13  ;;  %v491_v33 = vmax.f32 %v470_v31, 0.0 }
  0xeb   : > { %v481_v16 = vmax.f32 %v440_v15, 0.0  ;;  %585 = vmatmul.f32.gmra.mxu3 %v491_v33 }
  0xed   : > { %555 = vmatmul.f32.vlgmr.msra.gmra.mxu2 %v481_v16 }
  0xf0   : > { %v442_v17 = vpop.f32.mrf.mxu0 }
  0xf1   : > { %v443_v19 = vadd.f32 %v1475_v45, %v442_v17 }
  0xf3   : > { %v482_v20 = vmax.f32 %v443_v19, 0.0 }
  0xf5   : > { %558 = vmatmul.f32.gmra.mxu2 %v482_v20 }
  0xfd   : > { %561 = vmatmul.f32.gmra.mxu2 %v483_v23 }
 0x105   : > { %564 = vmatmul.f32.gmra.mxu2 %v484_v27 }
 0x10d   : > { %567 = vmatmul.f32.gmra.mxu2 %v485_v32 }
 0x115   : > { %570 = vmatmul.f32.gmra.mxu2 %v486_v35 }
 0x11d   : > { %573 = vmatmul.f32.gmra.mxu2 %v487_v37 }
 0x122   : > { %v529_v40 = vpop.f32.mrf.mxu1 }
 0x123   : > { %v530_v42 = vadd.f32 %v1499_v39, %v529_v40 }
 0x125   : > { %v589_v44 = vmax.f32 %v530_v42, 0.0  ;;  %576 = vmatmul.f32.gmra.mxu2 %v488_v41 }
 0x127   : > { %v613_v47 = vmul.f32 %v1505_v43, %v589_v44 }
 0x129   : > { %633 = vadd.xlane.f32.xlu0 %v613_v47 }
 0x12a   : > { %v532_v48 = vpop.f32.mrf.mxu1 }
 0x12b   : > { %v533_v50 = vadd.f32 %v1499_v39, %v532_v48 }
 0x12d   : > { %v590_v51 = vmax.f32 %v533_v50, 0.0  ;;  %579 = vmatmul.f32.gmra.mxu2 %v489_v49 }
 0x12f   : > { %v614_v52 = vmul.f32 %v1505_v43, %v590_v51 }
 0x131   : > { %635 = vadd.xlane.f32.xlu0 %v614_v52 }
 0x132   : > { %v535_v53 = vpop.f32.mrf.mxu1 }
 0x133   : > { %v536_v54 = vadd.f32 %v1499_v39, %v535_v53 }
 0x135   : > { %v591_v55 = vmax.f32 %v536_v54, 0.0 }
 0x137   : > { %v615_v56 = vmul.f32 %v1505_v43, %v591_v55 }
 0x139   : > { %637 = vadd.xlane.f32.xlu1 %v615_v56 }
 0x13a   : > { %v538_v45 = vpop.f32.mrf.mxu1 }
 0x13b   : > { %v539_v57 = vadd.f32 %v1499_v39, %v538_v45 }
 0x13d   : > { %v592_v58 = vmax.f32 %v539_v57, 0.0 }
 0x13f   : > { %v616_v59 = vmul.f32 %v1505_v43, %v592_v58 }
 0x141   : > { %639 = vadd.xlane.f32.xlu1 %v616_v59 }
 0x142   : > { %v541_v60 = vpop.f32.mrf.mxu1 }
 0x143   : > { %v542_v61 = vadd.f32 %v1499_v39, %v541_v60 }
 0x145   : > { %v593_v62 = vmax.f32 %v542_v61, 0.0 }
 0x147   : > { %v617_v63 = vmul.f32 %v1505_v43, %v593_v62 }
 0x149   : > { %641 = vadd.xlane.f32.xlu2 %v617_v63 }
 0x14a   : > { %v544_v0 = vpop.f32.mrf.mxu1 }
 0x14b   : > { %v545_v1 = vadd.f32 %v1499_v39, %v544_v0 }
 0x14d   : > { %v594_v2 = vmax.f32 %v545_v1, 0.0 }
 0x14f   : > { %v618_v3 = vmul.f32 %v1505_v43, %v594_v2 }
 0x151   : > { %643 = vadd.xlane.f32.xlu2 %v618_v3 }
 0x152   : > { %v547_v4 = vpop.f32.mrf.mxu1 }
 0x153   : > { %v548_v5 = vadd.f32 %v1499_v39, %v547_v4 }
 0x155   : > { %v595_v6 = vmax.f32 %v548_v5, 0.0 }
 0x157   : > { %v619_v7 = vmul.f32 %v1505_v43, %v595_v6 }
 0x159   : > { %645 = vadd.xlane.f32.xlu0 %v619_v7 }
 0x15a   : > { %v550_v8 = vpop.f32.mrf.mxu1 }
 0x15b   : > { %v551_v9 = vadd.f32 %v1499_v39, %v550_v8 }
 0x15d   : > { %v596_v10 = vmax.f32 %v551_v9, 0.0 }
 0x15f   : > { %v620_v11 = vmul.f32 %v1505_v43, %v596_v10 }
 0x161   : > { %647 = vadd.xlane.f32.xlu1 %v620_v11 }
 0x162   : > { %v553_v12 = vpop.f32.mrf.mxu1 }
 0x163   : > { %v554_v13 = vadd.f32 %v1499_v39, %v553_v12 }
 0x165   : > { %v597_v14 = vmax.f32 %v554_v13, 0.0 }
 0x166   : > { %v583_v46 = vpop.f32.mrf.mxu3 }
 0x167   : > { %v621_v15 = vmul.f32 %v1505_v43, %v597_v14  ;;  %v584_v50 = vadd.f32 %v1499_v39, %v583_v46 }
 0x169   : > { %649 = vadd.xlane.f32.xlu2 %v621_v15  ;;  %v607_v54 = vmax.f32 %v584_v50, 0.0 }
 0x16b   : > { %v631_v58 = vmul.f32 %v1505_v43, %v607_v54 }
 0x16e   : > { %v586_v56 = vpop.f32.mrf.mxu3 }
 0x16f   : > { %v587_v59 = vadd.f32 %v1499_v39, %v586_v56 }
 0x170   : > { %v556_v16 = vpop.f32.mrf.mxu2 }
 0x171   : > { %v557_v17 = vadd.f32 %v1499_v39, %v556_v16  ;;  %v608_v63 = vmax.f32 %v587_v59, 0.0 }
 0x173   : > { %v598_v18 = vmax.f32 %v557_v17, 0.0  ;;  %v632_v3 = vmul.f32 %v1505_v43, %v608_v63 }
 0x175   : > { %v622_v19 = vmul.f32 %v1505_v43, %v598_v18 }
 0x177   : > { %651 = vadd.xlane.f32.xlu0 %v622_v19 }
 0x178   : > { %v559_v20 = vpop.f32.mrf.mxu2 }
 0x179   : > { %v560_v21 = vadd.f32 %v1499_v39, %v559_v20 }
 0x17b   : > { %v599_v22 = vmax.f32 %v560_v21, 0.0 }
 0x17d   : > { %v623_v23 = vmul.f32 %v1505_v43, %v599_v22 }
 0x17f   : > { %653 = vadd.xlane.f32.xlu1 %v623_v23 }
 0x180   : > { %v562_v24 = vpop.f32.mrf.mxu2 }
 0x181   : > { %v563_v25 = vadd.f32 %v1499_v39, %v562_v24 }
 0x183   : > { %v600_v26 = vmax.f32 %v563_v25, 0.0 }
 0x185   : > { %v624_v27 = vmul.f32 %v1505_v43, %v600_v26 }
 0x187   : > { %655 = vadd.xlane.f32.xlu2 %v624_v27 }
 0x188   : > { %v565_v28 = vpop.f32.mrf.mxu2 }
 0x189   : > { %v566_v29 = vadd.f32 %v1499_v39, %v565_v28 }
 0x18b   : > { %v601_v30 = vmax.f32 %v566_v29, 0.0 }
 0x18d   : > { %v625_v31 = vmul.f32 %v1505_v43, %v601_v30 }
 0x18f   : > { %657 = vadd.xlane.f32.xlu0 %v625_v31 }
 0x190   : > { %v568_v32 = vpop.f32.mrf.mxu2 }
 0x191   : > { %v569_v33 = vadd.f32 %v1499_v39, %v568_v32 }
 0x193   : > { %v602_v34 = vmax.f32 %v569_v33, 0.0 }
 0x195   : > { %v626_v35 = vmul.f32 %v1505_v43, %v602_v34 }
 0x197   : > { %659 = vadd.xlane.f32.xlu1 %v626_v35 }
 0x198   : > { %v571_v36 = vpop.f32.mrf.mxu2 }
 0x199   : > { %v572_v37 = vadd.f32 %v1499_v39, %v571_v36 }
 0x19b   : > { %v603_v40 = vmax.f32 %v572_v37, 0.0 }
 0x19c   : > { %v634_v41 = vpop.xlane.xlu0 %633 }
 0x19d   : > { %v677_v42 = vadd.f32 %v1537_v38, %v634_v41  ;;  %v627_v44 = vmul.f32 %v1505_v43, %v603_v40 }
 0x19f   : > { %698 = vst.msk [vmem:[%s1541_s23] sm:$0xff] %vm697_vm1, %v677_v42  ;;  %661 = vadd.xlane.f32.xlu2 %v627_v44 }
 0x1a0   : > { %v574_v47 = vpop.f32.mrf.mxu2 }
 0x1a1   : > { %v575_v48 = vadd.f32 %v1499_v39, %v574_v47 }
 0x1a3   : > { %v604_v49 = vmax.f32 %v575_v48, 0.0 }
 0x1a4   : > { %v636_v51 = vpop.xlane.xlu0 %635 }
 0x1a5   : > { %v678_v52 = vadd.f32 %v1537_v38, %v636_v51  ;;  %v628_v53 = vmul.f32 %v1505_v43, %v604_v49 }
 0x1a7   : > { %699 = vst.msk [vmem:[%s1541_s23 + $0x8] sm:$0xff] %vm697_vm1, %v678_v52  ;;  %663 = vadd.xlane.f32.xlu0 %v628_v53 }
 0x1a8   : > { %v577_v55 = vpop.f32.mrf.mxu2 }
 0x1a9   : > { %v578_v45 = vadd.f32 %v1499_v39, %v577_v55 }
 0x1ab   : > { %v605_v57 = vmax.f32 %v578_v45, 0.0 }
 0x1ac   : > { %v638_v60 = vpop.xlane.xlu1 %637 }
 0x1ad   : > { %v679_v61 = vadd.f32 %v1537_v38, %v638_v60  ;;  %v629_v62 = vmul.f32 %v1505_v43, %v605_v57 }
 0x1af   : > { %700 = vst.msk [vmem:[%s1541_s23 + $0x10] sm:$0xff] %vm697_vm1, %v679_v61  ;;  %665 = vadd.xlane.f32.xlu1 %v629_v62  ;;  %669 = vadd.xlane.f32.xlu0 %v631_v58 }
 0x1b0   : > { %v580_v0 = vpop.f32.mrf.mxu2 }
 0x1b1   : > { %v581_v1 = vadd.f32 %v1499_v39, %v580_v0 }
 0x1b3   : > { %v606_v2 = vmax.f32 %v581_v1, 0.0 }
 0x1b4   : > { %v640_v4 = vpop.xlane.xlu1 %639 }
 0x1b5   : > { %v680_v5 = vadd.f32 %v1537_v38, %v640_v4  ;;  %v630_v6 = vmul.f32 %v1505_v43, %v606_v2 }
 0x1b7   : > { %701 = vst.msk [vmem:[%s1541_s23 + $0x18] sm:$0xff] %vm697_vm1, %v680_v5  ;;  %667 = vadd.xlane.f32.xlu2 %v630_v6  ;;  %671 = vadd.xlane.f32.xlu1 %v632_v3 }
 0x1bc   : > { %v642_v7 = vpop.xlane.xlu2 %641 }
 0x1bd   : > { %v681_v8 = vadd.f32 %v1537_v38, %v642_v7 }
 0x1bf   : > { %702 = vst.msk [vmem:[%s1541_s23 + $0x20] sm:$0xff] %vm697_vm1, %v681_v8 }
 0x1c4   : > { %v644_v39 = vpop.xlane.xlu2 %643 }
 0x1c5   : > { %v682_v9 = vadd.f32 %v1537_v38, %v644_v39 }
 0x1c7   : > { %703 = vst.msk [vmem:[%s1541_s23 + $0x28] sm:$0xff] %vm697_vm1, %v682_v9 }
 0x1cc   : > { %v646_v10 = vpop.xlane.xlu0 %645 }
 0x1cd   : > { %v683_v43 = vadd.f32 %v1537_v38, %v646_v10 }
 0x1cf   : > { %704 = vst.msk [vmem:[%s1541_s23 + $0x30] sm:$0xff] %vm697_vm1, %v683_v43 }
 0x1d4   : > { %v648_v11 = vpop.xlane.xlu1 %647 }
 0x1d5   : > { %v684_v12 = vadd.f32 %v1537_v38, %v648_v11 }
 0x1d7   : > { %705 = vst.msk [vmem:[%s1541_s23 + $0x38] sm:$0xff] %vm697_vm1, %v684_v12 }
 0x1dc   : > { %v650_v13 = vpop.xlane.xlu2 %649 }
 0x1dd   : > { %v685_v14 = vadd.f32 %v1537_v38, %v650_v13 }
 0x1df   : > { %706 = vst.msk [vmem:[%s1541_s23 + $0x40] sm:$0xff] %vm697_vm1, %v685_v14 }
 0x1ea   : > { %v652_v15 = vpop.xlane.xlu0 %651 }
 0x1eb   : > { %v686_v16 = vadd.f32 %v1537_v38, %v652_v15 }
 0x1ed   : > { %707 = vst.msk [vmem:[%s1541_s23 + $0x48] sm:$0xff] %vm697_vm1, %v686_v16 }
 0x1f2   : > { %v654_v17 = vpop.xlane.xlu1 %653 }
 0x1f3   : > { %v687_v18 = vadd.f32 %v1537_v38, %v654_v17 }
 0x1f5   : > { %708 = vst.msk [vmem:[%s1541_s23 + $0x50] sm:$0xff] %vm697_vm1, %v687_v18 }
 0x1fa   : > { %v656_v19 = vpop.xlane.xlu2 %655 }
 0x1fb   : > { %v688_v20 = vadd.f32 %v1537_v38, %v656_v19 }
 0x1fd   : > { %709 = vst.msk [vmem:[%s1541_s23 + $0x58] sm:$0xff] %vm697_vm1, %v688_v20 }
 0x202   : > { %v658_v21 = vpop.xlane.xlu0 %657 }
 0x203   : > { %v689_v22 = vadd.f32 %v1537_v38, %v658_v21 }
 0x205   : > { %710 = vst.msk [vmem:[%s1541_s23 + $0x60] sm:$0xff] %vm697_vm1, %v689_v22 }
 0x20a   : > { %v660_v23 = vpop.xlane.xlu1 %659 }
 0x20b   : > { %v690_v24 = vadd.f32 %v1537_v38, %v660_v23 }
 0x20d   : > { %711 = vst.msk [vmem:[%s1541_s23 + $0x68] sm:$0xff] %vm697_vm1, %v690_v24 }
 0x212   : > { %v662_v25 = vpop.xlane.xlu2 %661 }
 0x213   : > { %v691_v26 = vadd.f32 %v1537_v38, %v662_v25 }
 0x215   : > { %712 = vst.msk [vmem:[%s1541_s23 + $0x70] sm:$0xff] %vm697_vm1, %v691_v26 }
 0x21a   : > { %v664_v27 = vpop.xlane.xlu0 %663 }
 0x21b   : > { %v692_v28 = vadd.f32 %v1537_v38, %v664_v27 }
 0x21d   : > { %713 = vst.msk [vmem:[%s1541_s23 + $0x78] sm:$0xff] %vm697_vm1, %v692_v28 }
 0x222   : > { %v666_v29 = vpop.xlane.xlu1 %665  ;;  %v670_v30 = vpop.xlane.xlu0 %669 }
 0x223   : > { %v693_v31 = vadd.f32 %v1537_v38, %v666_v29  ;;  %v695_v32 = vadd.f32 %v1537_v38, %v670_v30 }
 0x225   : > { %714 = vst.msk [vmem:[%s1541_s23 + $0x80] sm:$0xff] %vm697_vm1, %v693_v31 }
 0x226   : > { %716 = vst.msk [vmem:[%s1541_s23 + $0x90] sm:$0xff] %vm697_vm1, %v695_v32 }
 0x22a   : > { %v668_v33 = vpop.xlane.xlu2 %667  ;;  %v672_v34 = vpop.xlane.xlu1 %671  ;;  %724 = sbr.rel (!%p1346_p4) target bundleno = 626 (0x272), region = 52 }
 0x22b   : > { %v694_v35 = vadd.f32 %v1537_v38, %v668_v33  ;;  %v696_v36 = vadd.f32 %v1537_v38, %v672_v34 }
 0x22d   : > { %715 = vst.msk [vmem:[%s1541_s23 + $0x88] sm:$0xff] %vm697_vm1, %v694_v35 }
 0x22e   : > { %717 = vst.msk [vmem:[%s1541_s23 + $0x98] sm:$0xff] %vm697_vm1, %v696_v36 }
 0x22f   : > { %s1741_s26 = smov (!%p727_p8, %s726_s26), 20 }
 0x230   : > { %s1037_s8 = sshll.u32 %s1741_s26, 3 }
 0x231   : > { %p1040_p9 = scmp.eq.s32.totalorder %s1037_s8, 0 }
 0x232   : > { %1184 = sdivrem.u32 (!%p1040_p9), %s1741_s26, 20 }
 0x233   : > { %735 = sbr.rel (%p1040_p9) target bundleno = 626 (0x272), region = 56 }
 0x23b   : > { %s1625_s10 = spop.drf %1184 }
 0x23c   : > { %s1186_s11 = spop.drf %1184  ;;  %p1041_p10 = scmp.le.s32.totalorder %s1625_s10, 0 }
 0x23d   : > { %s1732_s6 = smov (!%p1041_p10), %s1619_s30  ;;  %s1733_s15 = smov (!%p1041_p10), %s1541_s23 }
 0x23e   : > { %968 = sbr.rel (%p1041_p10) target bundleno = 600 (0x258), region = 132  ;;  %s1634_s13 = smov (!%p1041_p10), 0  }
 0x23f   : > { %s1636_s14 = smov (!%p1041_p10), 0  }
 0x243 LB: >> { %v838_v37 = vld [vmem:[%s1252_s15] sm:$0xff]  ;;  %v840_v38 = vld [vmem:[%s1252_s15 + $0x8] sm:$0xff]  ;;  %v842_v40 = vld [vmem:[%s1252_s15 + $0x10] sm:$0xff]  ;;  %s878_s16 = sadd.s32 1, %s1256_s13  ;;  %s832_s14 = sadd.s32 1, %s1260_s14   ;;  %s1260_s14 = sphi %s1636_s14, %s832_s14   ;;  %s1256_s13 = sphi %s1634_s13, %s1736_s13   ;;  %s1252_s15 = sphi %s1733_s15, %s1735_s15   ;;  %s1248_s6 = sphi %s1732_s6, %s1734_s6  }
 0x244   : >> { %839 = vst [vmem:[%s1248_s6] sm:$0xff] %v838_v37  ;;  %v844_v41 = vld [vmem:[%s1252_s15 + $0x18] sm:$0xff]  ;;  %p879_p11 = scmp.ge.s32.totalorder %s878_s16, %s1625_s10  ;;  %v846_v42 = vld [vmem:[%s1252_s15 + $0x20] sm:$0xff]  ;;  %v848_v44 = vld [vmem:[%s1252_s15 + $0x28] sm:$0xff]  ;;  %p831_p12 = scmp.ge.s32.totalorder %s832_s14, %s1625_s10 }
 0x245   : >> { %841 = vst [vmem:[%s1248_s6 + $0x8] sm:$0xff] %v840_v38  ;;  %v850_v46 = vld [vmem:[%s1252_s15 + $0x30] sm:$0xff]  ;;  %v852_v47 = vld [vmem:[%s1252_s15 + $0x38] sm:$0xff]  ;;  %v854_v48 = vld [vmem:[%s1252_s15 + $0x40] sm:$0xff] }
 0x246   : >> { %843 = vst [vmem:[%s1248_s6 + $0x10] sm:$0xff] %v842_v40  ;;  %s1743_s16 = smov (%p879_p11, %s878_s16), 0  ;;  %v856_v49 = vld [vmem:[%s1252_s15 + $0x48] sm:$0xff]  ;;  %v858_v50 = vld [vmem:[%s1252_s15 + $0x50] sm:$0xff]  ;;  %v860_v51 = vld [vmem:[%s1252_s15 + $0x58] sm:$0xff] }
 0x247   : >> { %845 = vst [vmem:[%s1248_s6 + $0x18] sm:$0xff] %v844_v41  ;;  %s881_s17 = smul.u32 160, %s1743_s16  ;;  %v862_v52 = vld [vmem:[%s1252_s15 + $0x60] sm:$0xff]  ;;  %v864_v53 = vld [vmem:[%s1252_s15 + $0x68] sm:$0xff]  ;;  %v866_v54 = vld [vmem:[%s1252_s15 + $0x70] sm:$0xff]  ;;  %s1736_s13 = smov %s1743_s16 }
 0x248   : >> { %847 = vst [vmem:[%s1248_s6 + $0x20] sm:$0xff] %v846_v42  ;;  %v868_v55 = vld [vmem:[%s1252_s15 + $0x78] sm:$0xff]  ;;  %v870_v56 = vld [vmem:[%s1252_s15 + $0x80] sm:$0xff]  ;;  %v872_v45 = vld [vmem:[%s1252_s15 + $0x88] sm:$0xff] }
 0x249   : >> { %849 = vst [vmem:[%s1248_s6 + $0x28] sm:$0xff] %v848_v44  ;;  %s883_s12 = scalar_lea.vmem %s1541_s23, %s881_s17 [#allocation3]   ;;  %s884_s18 = scalar_lea.vmem %s1619_s30, %s881_s17   ;;  %v874_v57 = vld [vmem:[%s1252_s15 + $0x90] sm:$0xff]  ;;  %v876_v58 = vld [vmem:[%s1252_s15 + $0x98] sm:$0xff] }
 0x24a   : >> { %851 = vst [vmem:[%s1248_s6 + $0x30] sm:$0xff] %v850_v46  ;;  %s1735_s15 = smov %s883_s12 }
 0x24b   : >> { %853 = vst [vmem:[%s1248_s6 + $0x38] sm:$0xff] %v852_v47 }
 0x24c   : >> { %855 = vst [vmem:[%s1248_s6 + $0x40] sm:$0xff] %v854_v48 }
 0x24d   : >> { %857 = vst [vmem:[%s1248_s6 + $0x48] sm:$0xff] %v856_v49 }
 0x24e   : >> { %859 = vst [vmem:[%s1248_s6 + $0x50] sm:$0xff] %v858_v50 }
 0x24f   : >> { %861 = vst [vmem:[%s1248_s6 + $0x58] sm:$0xff] %v860_v51 }
 0x250   : >> { %863 = vst [vmem:[%s1248_s6 + $0x60] sm:$0xff] %v862_v52 }
 0x251   : >> { %865 = vst [vmem:[%s1248_s6 + $0x68] sm:$0xff] %v864_v53 }
 0x252   : >> { %867 = vst [vmem:[%s1248_s6 + $0x70] sm:$0xff] %v866_v54 }
 0x253   : >> { %869 = vst [vmem:[%s1248_s6 + $0x78] sm:$0xff] %v868_v55  ;;  %834 = sbr.rel (!%p831_p12) target bundleno = 579 (0x243), region = 138 }
 0x254   : >> { %871 = vst [vmem:[%s1248_s6 + $0x80] sm:$0xff] %v870_v56 }
 0x255   : >> { %873 = vst [vmem:[%s1248_s6 + $0x88] sm:$0xff] %v872_v45 }
 0x256   : >> { %875 = vst [vmem:[%s1248_s6 + $0x90] sm:$0xff] %v874_v57 }
 0x257   : >> { %877 = vst [vmem:[%s1248_s6 + $0x98] sm:$0xff] %v876_v58  ;;  %s1734_s6 = smov %s884_s18 }
 0x258 PF: > { %1187 = sdivrem.u32 %s1741_s26, 20 }
 0x259   : > { %s1042_s19 = smul.u32 160, %s1625_s10 }
 0x25b   : > { %s1708_s20 = scalar_lea.vmem %s1541_s23, %s1042_s19 [#allocation3]   ;;  %s891_s21 = scalar_lea.vmem %s1619_s30, %s1042_s19  }
 0x261   : > { %s1188_s22 = spop.drf %1187 }
 0x262   : > { %s1189_s24 = spop.drf %1187 }
 0x263   : > { %p1044_p13 = scmp.le.s32.totalorder %s1189_s24, 0 }
 0x264   : > { %s1262_s25 = smov (!%p1044_p13), %s891_s21   ;;  %s1266_s28 = smov (!%p1044_p13), %s1708_s20  }
 0x265   : > { %982 = sbr.rel (%p1044_p13) target bundleno = 626 (0x272), region = 143  ;;  %s1270_s8 = smov (!%p1044_p13), 0  }
 0x266   : > { %s1274_s11 = smov (!%p1044_p13), 0  }
 0x26a LB: >> { %v901_v59 = vld [vmem:[%s1268_s28] sm:$0xff]  ;;  %s903_s23 = sadd.s32 1, %s1272_s8  ;;  %s895_s11 = sadd.s32 1, %s1276_s11   ;;  %s1276_s11 = sphi %s1274_s11, %s895_s11   ;;  %s1272_s8 = sphi %s1270_s8, %s1271_s8   ;;  %s1268_s28 = sphi %s1266_s28, %s908_s28   ;;  %s1264_s25 = sphi %s1262_s25, %s909_s25  }
 0x26b   : >> { %902 = vst [vmem:[%s1264_s25] sm:$0xff] %v901_v59  ;;  %p904_p0 = scmp.ge.s32.totalorder %s903_s23, %s1189_s24  ;;  %p894_p1 = scmp.ge.s32.totalorder %s895_s11, %s1189_s24 }
 0x26d   : >> { %s1745_s23 = smov (%p904_p0, %s903_s23), 0  ;;  %897 = sbr.rel (!%p894_p1) target bundleno = 618 (0x26a), region = 149 }
 0x26e   : >> { %s1045_s26 = sshll.u32 %s1745_s23, 3  ;;  %s1271_s8 = smov %s1745_s23  }
 0x26f   : >> { %s908_s28 = scalar_lea.vmem %s1708_s20, %s1045_s26 [#allocation3]   ;;  %s909_s25 = scalar_lea.vmem %s891_s21, %s1045_s26  }
 0x272 PF: > { %p16_p2 = scmp.ge.s32.totalorder %s1336_s29, 4   ;;  %s1737_s26 = smov %s1240_s27 }
 0x273   : > { %s1738_s27 = smov %s1344_s9  ;;  %s1739_s28 = smov %s1336_s29 }
 0x274   :  { %18 = sbr.rel (!%p16_p2) target bundleno = 5 (0x5), region = 160 }

</bundles_post_ra>
